<compile_context>
chip_gen: v7x
topology: tpu7x:2x2x1
jax: 0.10.0
libtpu: 0.0.40
codegen_flags: <defaults>
</compile_context>

<pallas_src>
import functools

import jax
import jax.numpy as jnp
import numpy as np
from jax.experimental import pallas as pl
from jax.experimental.pallas import tpu as pltpu

_PAR_COLS = 32          # per-batch parameter-table width (padded to a nice vreg width)
_N_PAR = 28             # number of parameters actually used
_VMEM_BUDGET = 32 * 1024 * 1024   # working-set budget; conservative for v7x (64 MiB VMEM)

# row-major 4x4 from the 10 unique entries [h00,h01,h02,h03,h11,h12,h13,h22,h23,h33]
_SYM_IDX = np.array([0, 1, 2, 3,
                     1, 4, 5, 6,
                     2, 5, 7, 8,
                     3, 6, 8, 9], dtype=np.int32)


# ---------------------------------------------------------------------------
# Shared compute core: 10 unique entries of H = J^T J for one tile.
# ---------------------------------------------------------------------------
def _hessian_entries(z_min, X, Y, Z3, wistd_u, wistd_v, par, red_axis):
    (kr00, kr01, kr02, kr10, kr11, kr12, kr20, kr21, kr22,
     kt0, kt1, kt2, u_lb, u_ub, v_lb, v_ub,
     m100, m101, m110, m111, s, c,
     f00, f01, f02, f10, f11, f12) = par

    # forward projection with z / uv clipping (forward_proj)
    u_h = kr00 * X + kr01 * Y + kr02 * Z3 + kt0
    v_h = kr10 * X + kr11 * Y + kr12 * Z3 + kt1
    z = kr20 * X + kr21 * Y + kr22 * Z3 + kt2

    z_clip = z < z_min
    z = jnp.where(z_clip, z_min, z)
    inv_z = pl.reciprocal(z, approx=True)          # EUP slot (otherwise idle)
    inv_z = inv_z * (2.0 - z * inv_z)              # one NR step: 2 VPU ops, f32 accuracy
    u = u_h * inv_z
    v = v_h * inv_z

    u_clip = (u < u_lb) | (u > u_ub)
    v_clip = (v < v_lb) | (v > v_ub)
    u = jnp.clip(u, u_lb, u_ub)
    v = jnp.clip(v, v_lb, v_ub)

    # inlier mask is already folded into wistd_* by the wrapper; fold clip masks + 1/z here
    wu = jnp.where(z_clip | u_clip, 0.0, wistd_u * inv_z)
    wv = jnp.where(z_clip | v_clip, 0.0, wistd_v * inv_z)

    # pose Jacobian columns, ordered [yaw, tx, ty, tz] (get_pose_jacobians)
    w = c * X + s * Z3
    jy_u = (m100 * X + m101 * Z3 + u * w) * wu
    jy_v = (m110 * X + m111 * Z3 + v * w) * wv
    jtx_u = f00 * wu
    jtx_v = f10 * wv
    jty_u = f01 * wu
    jty_v = f11 * wv
    jtz_u = (f02 - u) * wu
    jtz_v = (f12 - v) * wv

    def dot2(au, av, bu, bv):
        return jnp.sum(au * bu + av * bv, axis=red_axis, keepdims=True)

    return [dot2(jy_u, jy_v, jy_u, jy_v),      # h00
            dot2(jy_u, jy_v, jtx_u, jtx_v),    # h01
            dot2(jy_u, jy_v, jty_u, jty_v),    # h02
            dot2(jy_u, jy_v, jtz_u, jtz_v),    # h03
            dot2(jtx_u, jtx_v, jtx_u, jtx_v),  # h11
            dot2(jtx_u, jtx_v, jty_u, jty_v),  # h12
            dot2(jtx_u, jtx_v, jtz_u, jtz_v),  # h13
            dot2(jty_u, jty_v, jty_u, jty_v),  # h22
            dot2(jty_u, jty_v, jtz_u, jtz_v),  # h23
            dot2(jtz_u, jtz_v, jtz_u, jtz_v)]  # h33


def _hessian_kernel_points_on_lanes(z_min, data_ref, par_ref, h_ref):
    # data_ref: (5, TB, N_pad)  channels: 0=X 1=Y 2=Z 3=istd_u*inl 4=istd_v*inl
    # par_ref : (TB, 32)        per-batch precomputed scalars
    # h_ref   : (TB, 10)        unique Hessian entries per batch row
    p = par_ref[...]
    par = tuple(p[:, k:k + 1] for k in range(_N_PAR))          # (TB, 1) scalars
    ents = _hessian_entries(z_min,
                            data_ref[0, :, :], data_ref[1, :, :], data_ref[2, :, :],
                            data_ref[3, :, :], data_ref[4, :, :],
                            par, red_axis=-1)
    h_ref[...] = jnp.concatenate(ents, axis=-1)                 # (TB, 10)


def _hessian_kernel_batch_on_lanes(z_min, data_ref, par_ref, h_ref):
    # data_ref: (5, N_pad8, TB)   batch on the 128-lane axis, points on sublanes
    # par_ref : (32, TB)
    # h_ref   : (10, TB)          lane-dense unmasked store
    p = par_ref[...]
    par = tuple(p[k:k + 1, :] for k in range(_N_PAR))           # (1, TB) scalars
    ents = _hessian_entries(z_min,
                            data_ref[0, :, :], data_ref[1, :, :], data_ref[2, :, :],
                            data_ref[3, :, :], data_ref[4, :, :],
                            par, red_axis=0)
    h_ref[...] = jnp.concatenate(ents, axis=0)                  # (10, TB)


# ---------------------------------------------------------------------------
# Wrapper helpers.
# ---------------------------------------------------------------------------
def _build_params(cam_mats, u_range, v_range, yaw, t_vec, B):
    """Per-batch precomputed scalars: (B, 32) f32 table."""
    f32 = jnp.float32
    cam = jnp.broadcast_to(cam_mats.astype(f32), (B, 3, 3))
    ur = jnp.broadcast_to(u_range.astype(f32), (B, 2))
    vr = jnp.broadcast_to(v_range.astype(f32), (B, 2))
    s = jnp.sin(yaw[:, 0]).astype(f32)
    c = jnp.cos(yaw[:, 0]).astype(f32)
    tv = t_vec.astype(f32)

    f00, f01, f02 = cam[:, 0, 0], cam[:, 0, 1], cam[:, 0, 2]
    f10, f11, f12 = cam[:, 1, 0], cam[:, 1, 1], cam[:, 1, 2]
    f20, f21, f22 = cam[:, 2, 0], cam[:, 2, 1], cam[:, 2, 2]

    # K @ R(yaw) with R = [[c,0,s],[0,1,0],[-s,0,c]]
    kr00 = f00 * c - f02 * s; kr01 = f01; kr02 = f00 * s + f02 * c
    kr10 = f10 * c - f12 * s; kr11 = f11; kr12 = f10 * s + f12 * c
    kr20 = f20 * c - f22 * s; kr21 = f21; kr22 = f20 * s + f22 * c
    kt = jnp.einsum('bij,bj->bi', cam, tv, precision=jax.lax.Precision.HIGHEST)
    # yaw-Jacobian m1 = K[:2,[0,2]] @ [[-s, c], [-c, -s]]
    m100 = -f00 * s - f02 * c; m101 = f00 * c - f02 * s
    m110 = -f10 * s - f12 * c; m111 = f10 * c - f12 * s

    zb = jnp.zeros_like(f00)
    cols = [kr00, kr01, kr02, kr10, kr11, kr12, kr20, kr21, kr22,
            kt[:, 0], kt[:, 1], kt[:, 2],
            ur[:, 0], ur[:, 1], vr[:, 0], vr[:, 1],
            m100, m101, m110, m111, s, c,
            f00, f01, f02, f10, f11, f12]
    cols += [zb] * (_PAR_COLS - len(cols))
    return jnp.stack(cols, axis=1)                              # (B, 32)


def _choose_tile(B, n_other, *, lane_tile):
    """Batch tile size. lane_tile=True → tile lives on the 128-lane axis."""
    quantum = 128 if lane_tile else 8
    b_pad = quantum * ((B + quantum - 1) // quantum)
    # Working-set model: 2 double-buffered 5-channel input tiles + ~12 live full-tile
    # temporaries inside the body, all f32.
    per_elem = (2 * 5 + 12) * 4
    cap = max(quantum, (_VMEM_BUDGET // (per_elem * max(n_other, 1))) // quantum * quantum)
    tb = min(512, b_pad, cap)
    # Prefer >= 2 grid steps when the batch is big enough so the "parallel" batch axis
    # can shard across both TensorCores on v7x (irrelevant on 1-TC v5e/v6e).
    if b_pad >= 2 * quantum and tb >= b_pad:
        tb = max(quantum, (b_pad // 2) // quantum * quantum)
    return tb


def _vmem_limit(tb, n_other):
    data = (2 * 5 + 12) * tb * n_other * 4
    small = 2 * tb * (_PAR_COLS + 10) * 4
    return int(data + small + (4 << 20))


# ---------------------------------------------------------------------------
# Pallas approx_hessian wrapper.
# ---------------------------------------------------------------------------
def approx_hessian_pallas(coords_2d, coords_2d_istd, coords_3d, cam_mats,
                          u_range, v_range, z_min, yaw, t_vec, inlier_mask,
                          *, tb=None, layout=None):
    """Pallas implementation of approx_hessian(). Returns (B, 4, 4) float32."""
    del coords_2d  # the reprojection residual itself does not enter H = J^T J
    B, N, _ = coords_2d_istd.shape
    f32 = jnp.float32

    if layout is None:
        # Many-ROI / few-point workloads: put batch on lanes (VPU reductions, no N->128 pad).
        layout = "batch_lanes" if (B >= 128 and N <= 64) else "points_lanes"

    c3d = coords_3d.astype(f32)
    # Fold the inlier mask into the istd channels (their only consumer): outliers and
    # padded points get istd == 0, which forces their Jacobian weights to exactly 0.
    wistd = coords_2d_istd.astype(f32) * inlier_mask.astype(f32)[..., None]
    chans = jnp.stack([c3d[..., 0], c3d[..., 1], c3d[..., 2],
                       wistd[..., 0], wistd[..., 1]], axis=0)               # (5, B, N)
    # TODO(synk): if the upstream producer can emit this channel-major layout directly,
    # the stack/pad HBM round-trip below disappears (≈2x point-data traffic today).

    params = _build_params(cam_mats, u_range, v_range, yaw, t_vec, B)       # (B, 32)
    kernel_args = dict(z_min=float(z_min))

    if layout == "points_lanes":
        n_pad = 128 * ((N + 127) // 128)                 # lane-dense point axis
        if tb is None:
            tb = _choose_tile(B, n_pad, lane_tile=False)
        b_pad = tb * ((B + tb - 1) // tb)
        packed = jnp.pad(chans, ((0, 0), (0, b_pad - B), (0, n_pad - N)))
        par = jnp.pad(params, ((0, b_pad - B), (0, 0)))
        kernel = functools.partial(_hessian_kernel_points_on_lanes, kernel_args["z_min"])
        h10 = pl.pallas_call(
            kernel,
            out_shape=jax.ShapeDtypeStruct((b_pad, 10), f32),
            grid=(b_pad // tb,),
            in_specs=[pl.BlockSpec((5, tb, n_pad), lambda i: (0, i, 0)),
                      pl.BlockSpec((tb, _PAR_COLS), lambda i: (i, 0))],
            out_specs=pl.BlockSpec((tb, 10), lambda i: (i, 0)),
            compiler_params=pltpu.CompilerParams(
                dimension_semantics=("parallel",),
                vmem_limit_bytes=_vmem_limit(tb, n_pad)),
        )(packed, par)
        h10 = h10[:B]                                                       # (B, 10)
    else:  # batch_lanes
        n_pad = 8 * ((N + 7) // 8)                       # points on sublanes
        if tb is None:
            tb = _choose_tile(B, n_pad, lane_tile=True)
        b_pad = tb * ((B + tb - 1) // tb)
        packed = jnp.pad(jnp.transpose(chans, (0, 2, 1)),
                         ((0, 0), (0, n_pad - N), (0, b_pad - B)))          # (5, N_pad, B_pad)
        par = jnp.pad(params.T, ((0, 0), (0, b_pad - B)))                   # (32, B_pad)
        kernel = functools.partial(_hessian_kernel_batch_on_lanes, kernel_args["z_min"])
        h10 = pl.pallas_call(
            kernel,
            out_shape=jax.ShapeDtypeStruct((10, b_pad), f32),
            grid=(b_pad // tb,),
            in_specs=[pl.BlockSpec((5, n_pad, tb), lambda i: (0, 0, i)),
                      pl.BlockSpec((_PAR_COLS, tb), lambda i: (0, i))],
            out_specs=pl.BlockSpec((10, tb), lambda i: (0, i)),
            compiler_params=pltpu.CompilerParams(
                dimension_semantics=("parallel",),
                vmem_limit_bytes=_vmem_limit(tb, n_pad)),
        )(packed, par)
        h10 = h10[:, :B].T                                                  # (B, 10)

    # Symmetrize the 10 unique entries into the full 4x4.
    return jnp.take(h10, jnp.asarray(_SYM_IDX), axis=1).reshape(B, 4, 4)


# ---------------------------------------------------------------------------
# Pure-JAX mirror of the PyTorch approx_hessian (verification reference).
# ---------------------------------------------------------------------------
def approx_hessian_ref(coords_2d, coords_2d_istd, coords_3d, cam_mats, u_range, v_range,
                       z_min, yaw, t_vec, inlier_mask):
    del coords_2d
    hp = jax.lax.Precision.HIGHEST
    bn, pn, _ = coords_2d_istd.shape
    sin_yaw = jnp.sin(yaw)[:, 0]
    cos_yaw = jnp.cos(yaw)[:, 0]
    zeros = jnp.zeros_like(cos_yaw)
    ones = jnp.ones_like(cos_yaw)
    rot = jnp.stack([jnp.stack([cos_yaw, zeros, sin_yaw], -1),
                     jnp.stack([zeros, ones, zeros], -1),
                     jnp.stack([-sin_yaw, zeros, cos_yaw], -1)], axis=1)
    cam = jnp.broadcast_to(cam_mats, (bn, 3, 3))
    u_range = jnp.broadcast_to(u_range, (bn, 2))
    v_range = jnp.broadcast_to(v_range, (bn, 2))
    k_r = jnp.einsum('bij,bjk->bik', cam, rot, precision=hp)
    k_t = jnp.einsum('bij,bj->bi', cam, t_vec, precision=hp)
    uvz = jnp.einsum('bux,bnx->bnu', k_r, coords_3d, precision=hp) + k_t[:, None, :]
    uv, z = uvz[..., :2], uvz[..., 2:3]
    z_clip = z < z_min
    z = jnp.where(z_clip, z_min, z)
    uv = uv / z
    uv_lb = jnp.stack([u_range[:, 0], v_range[:, 0]], axis=1)[:, None, :]
    uv_ub = jnp.stack([u_range[:, 1], v_range[:, 1]], axis=1)[:, None, :]
    uv_clip = (uv < uv_lb) | (uv > uv_ub)
    uv = jnp.maximum(uv_lb, jnp.minimum(uv_ub, uv))
    zero_mask = z_clip | uv_clip | (~inlier_mask)[..., None]
    jac_xy = cam[:, None, :2, :2] / z[..., None]
    jac_z = (cam[:, None, :2, 2:3] - uv[..., None]) / z[..., None]
    jac_t = jnp.concatenate([jac_xy, jac_z], axis=3) * coords_2d_istd[..., None]
    jac_t = jnp.where(zero_mask[..., None], 0.0, jac_t)
    m1_l = jnp.stack([cam[:, 0:2, 0], cam[:, 0:2, 2]], axis=2)
    m1_r = jnp.stack([jnp.stack([-sin_yaw, cos_yaw], 1),
                      jnp.stack([-cos_yaw, -sin_yaw], 1)], axis=1)
    m1 = jnp.einsum('bij,bjk->bik', m1_l, m1_r, precision=hp)
    m2 = jnp.einsum('bnu,bx->bnux', uv, jnp.stack([cos_yaw, sin_yaw], 1), precision=hp)
    jm = m1[:, None] + m2
    c3d_xz = jnp.stack([coords_3d[..., 0], coords_3d[..., 2]], axis=-1)
    jac_yaw = jnp.einsum('bnux,bnx->bnu', jm, c3d_xz, precision=hp) / z
    jac_yaw = jac_yaw * coords_2d_istd
    jac_yaw = jnp.where(zero_mask, 0.0, jac_yaw)
    jac_pose = jnp.concatenate([jac_yaw[..., None], jac_t], axis=3).reshape(bn, pn * 2, 4)
    return jnp.einsum('bki,bkj->bij', jac_pose, jac_pose, precision=hp)


def istd_inlier_selection(coords_2d_istd, epnp_istd_thres):
    """Inlier selection from u2d_pnp_cpu / u2d_pnp_cpu_single (istd threshold + fallback)."""
    istd_mean = jnp.mean(coords_2d_istd, axis=1, keepdims=True)
    istd_inlier = jnp.all(coords_2d_istd >= epnp_istd_thres * istd_mean, axis=2)
    count = jnp.sum(istd_inlier.astype(jnp.int32), axis=1, keepdims=True)
    return jnp.where(count > 4, istd_inlier, jnp.ones_like(istd_inlier))


class PnPUncertPallas:
    """JAX/Pallas counterpart of PnPUncert.forward."""

    def __init__(self, z_min=0.5, epnp_istd_thres=0.6, inlier_opt_only=True,
                 coord_istd_normalize=False, forward_exact_hessian=False,
                 use_6dof=False, eps=1e-6):
        self.z_min = z_min
        self.epnp_istd_thres = epnp_istd_thres
        self.inlier_opt_only = inlier_opt_only
        self.coord_istd_normalize = coord_istd_normalize
        self.forward_exact_hessian = forward_exact_hessian
        self.use_6dof = use_6dof
        self.eps = eps

    def __call__(self, coords_2d, coords_2d_istd, coords_3d, cam_mats, u_range, v_range,
                 epnp_ransac_thres=None, yaw=None, t_vec=None):
        if self.coord_istd_normalize:
            mean = jnp.mean(coords_2d_istd, axis=(1, 2), keepdims=True)
            coords_2d_istd = coords_2d_istd / jnp.maximum(mean, self.eps)
        B = coords_2d.shape[0]
        inlier_mask = istd_inlier_selection(coords_2d_istd, self.epnp_istd_thres)
        # TODO(synk): EPnP init (cv2.solvePnP / solvePnPRansac) and Ceres L-M refinement
        # (lib.pnp_uncert) are external CPU solvers with no Pallas equivalent; a
        # deterministic placeholder pose is used when no pose is supplied.
        if yaw is None:
            yaw = jnp.full((B, 1), 0.3, jnp.float32)
        if t_vec is None:
            t_vec = jnp.tile(jnp.array([[0.1, -0.2, 5.0]], jnp.float32), (B, 1))
        h = approx_hessian_pallas(coords_2d, coords_2d_istd, coords_3d, cam_mats,
                                  u_range, v_range, self.z_min, yaw, t_vec, inlier_mask)
        # Guard (mirrors the torch.inverse try/except fallback): singular/degenerate H
        # (all points clipped or outliers) is replaced by identity and marked invalid.
        diag = jnp.diagonal(h, axis1=1, axis2=2)
        valid = jnp.all(diag > self.eps, axis=1)
        h_safe = jnp.where(valid[:, None, None], h, jnp.eye(4, dtype=h.dtype))
        pose_cov = jnp.linalg.inv(h_safe)
        ret_val = valid
        return ret_val, yaw, t_vec, pose_cov, inlier_mask


if __name__ == "__main__":
    key = jax.random.PRNGKey(0)
    module = PnPUncertPallas()

    def make_inputs(B, N, key):
        k1, k2, k3, k4, k5 = jax.random.split(key, 5)
        coords_3d = jax.random.uniform(k1, (B, N, 3), jnp.float32, minval=-1.0, maxval=1.0)
        coords_2d = jax.random.uniform(k2, (B, N, 2), jnp.float32, minval=0.0, maxval=128.0)
        coords_2d_istd = jax.random.uniform(k3, (B, N, 2), jnp.float32, minval=0.5, maxval=1.5)
        cam_mats = jnp.array([[[100.0, 0.0, 64.0],
                               [0.0, 100.0, 64.0],
                               [0.0, 0.0, 1.0]]], jnp.float32)      # (1, 3, 3), broadcast to B
        u_range = jnp.array([[0.0, 128.0]], jnp.float32)
        v_range = jnp.array([[0.0, 128.0]], jnp.float32)
        yaw = jax.random.uniform(k4, (B, 1), jnp.float32, minval=-0.4, maxval=0.4)
        t_vec = jnp.concatenate(
            [jax.random.uniform(k5, (B, 2), jnp.float32, minval=-0.5, maxval=0.5),
             jnp.full((B, 1), 5.0, jnp.float32) +
             jax.random.uniform(k5, (B, 1), jnp.float32, minval=0.0, maxval=2.0)], axis=1)
        return coords_2d, coords_2d_istd, coords_3d, cam_mats, u_range, v_range, yaw, t_vec

    def check(B, N, key):
        (coords_2d, coords_2d_istd, coords_3d, cam_mats,
         u_range, v_range, yaw, t_vec) = make_inputs(B, N, key)
        inlier_mask = istd_inlier_selection(coords_2d_istd, module.epnp_istd_thres)
        h_kernel = approx_hessian_pallas(coords_2d, coords_2d_istd, coords_3d, cam_mats,
                                         u_range, v_range, module.z_min, yaw, t_vec,
                                         inlier_mask)
        h_ref = approx_hessian_ref(coords_2d, coords_2d_istd, coords_3d, cam_mats,
                                   u_range, v_range, module.z_min, yaw, t_vec, inlier_mask)
        jax.block_until_ready(h_kernel)
        h_kernel_np = np.asarray(h_kernel)
        h_ref_np = np.asarray(h_ref)
        scale = float(np.abs(h_ref_np).max())
        np.testing.assert_allclose(h_kernel_np, h_ref_np, rtol=1e-3, atol=1e-4 * scale)
        return coords_2d, coords_2d_istd, coords_3d, cam_mats, u_range, v_range, yaw, t_vec

    # Small shape consistent with the module (B=2 ROIs, N=16 correspondences):
    # exercises the points-on-lanes layout.
    inputs_small = check(2, 16, jax.random.PRNGKey(0))

    # Many-ROI / few-point shape: exercises the batch-on-lanes layout (multi-step grid).
    check(160, 16, jax.random.PRNGKey(1))

    # Full forward (placeholder-pose path exercised via explicit yaw/t_vec, Pallas Hessian,
    # guarded 4x4 inverse for pose_cov).
    (coords_2d, coords_2d_istd, coords_3d, cam_mats,
     u_range, v_range, yaw, t_vec) = inputs_small
    outs = module(coords_2d, coords_2d_istd, coords_3d, cam_mats, u_range, v_range,
                  yaw=yaw, t_vec=t_vec)
    jax.block_until_ready(outs)
    assert np.all(np.isfinite(np.asarray(outs[3])))
    print("KERNEL_OK")
</pallas_src>

<mosaic_0001>
module attributes {stable_mosaic.version = 11 : i64} {
  func.func @_hessian_kernel_points_on_lanes(%arg0: i32, %arg1: memref<5x8x128xf32, #tpu.memory_space<vmem>>, %arg2: memref<8x32xf32, #tpu.memory_space<vmem>>, %arg3: memref<8x10xf32, #tpu.memory_space<vmem>>) attributes {dimension_semantics = [#tpu.dimension_semantics<parallel>], iteration_bounds = array<i64: 1>, scalar_prefetch = 0 : i64, scratch_operands = 0 : i64, tpu.core_type = #tpu.core_type<tc>, window_params = [{transform_indices = @transform_0, window_bounds = array<i64: 5, 8, 128>}, {transform_indices = @transform_1, window_bounds = array<i64: 8, 32>}, {transform_indices = @transform_2, window_bounds = array<i64: 8, 10>}]} {
    %c0 = arith.constant 0 : index
    %c0_0 = arith.constant 0 : index
    %0 = vector.load %arg2[%c0, %c0_0] : memref<8x32xf32, #tpu.memory_space<vmem>>, vector<8x32xf32>
    %1 = vector.extract_strided_slice %0 {offsets = [0, 0], sizes = [8, 1], strides = [1, 1]} : vector<8x32xf32> to vector<8x1xf32>
    %2 = vector.extract_strided_slice %0 {offsets = [0, 1], sizes = [8, 1], strides = [1, 1]} : vector<8x32xf32> to vector<8x1xf32>
    %3 = vector.extract_strided_slice %0 {offsets = [0, 2], sizes = [8, 1], strides = [1, 1]} : vector<8x32xf32> to vector<8x1xf32>
    %4 = vector.extract_strided_slice %0 {offsets = [0, 3], sizes = [8, 1], strides = [1, 1]} : vector<8x32xf32> to vector<8x1xf32>
    %5 = vector.extract_strided_slice %0 {offsets = [0, 4], sizes = [8, 1], strides = [1, 1]} : vector<8x32xf32> to vector<8x1xf32>
    %6 = vector.extract_strided_slice %0 {offsets = [0, 5], sizes = [8, 1], strides = [1, 1]} : vector<8x32xf32> to vector<8x1xf32>
    %7 = vector.extract_strided_slice %0 {offsets = [0, 6], sizes = [8, 1], strides = [1, 1]} : vector<8x32xf32> to vector<8x1xf32>
    %8 = vector.extract_strided_slice %0 {offsets = [0, 7], sizes = [8, 1], strides = [1, 1]} : vector<8x32xf32> to vector<8x1xf32>
    %9 = vector.extract_strided_slice %0 {offsets = [0, 8], sizes = [8, 1], strides = [1, 1]} : vector<8x32xf32> to vector<8x1xf32>
    %10 = vector.extract_strided_slice %0 {offsets = [0, 9], sizes = [8, 1], strides = [1, 1]} : vector<8x32xf32> to vector<8x1xf32>
    %11 = vector.extract_strided_slice %0 {offsets = [0, 10], sizes = [8, 1], strides = [1, 1]} : vector<8x32xf32> to vector<8x1xf32>
    %12 = vector.extract_strided_slice %0 {offsets = [0, 11], sizes = [8, 1], strides = [1, 1]} : vector<8x32xf32> to vector<8x1xf32>
    %13 = vector.extract_strided_slice %0 {offsets = [0, 12], sizes = [8, 1], strides = [1, 1]} : vector<8x32xf32> to vector<8x1xf32>
    %14 = vector.extract_strided_slice %0 {offsets = [0, 13], sizes = [8, 1], strides = [1, 1]} : vector<8x32xf32> to vector<8x1xf32>
    %15 = vector.extract_strided_slice %0 {offsets = [0, 14], sizes = [8, 1], strides = [1, 1]} : vector<8x32xf32> to vector<8x1xf32>
    %16 = vector.extract_strided_slice %0 {offsets = [0, 15], sizes = [8, 1], strides = [1, 1]} : vector<8x32xf32> to vector<8x1xf32>
    %17 = vector.extract_strided_slice %0 {offsets = [0, 16], sizes = [8, 1], strides = [1, 1]} : vector<8x32xf32> to vector<8x1xf32>
    %18 = vector.extract_strided_slice %0 {offsets = [0, 17], sizes = [8, 1], strides = [1, 1]} : vector<8x32xf32> to vector<8x1xf32>
    %19 = vector.extract_strided_slice %0 {offsets = [0, 18], sizes = [8, 1], strides = [1, 1]} : vector<8x32xf32> to vector<8x1xf32>
    %20 = vector.extract_strided_slice %0 {offsets = [0, 19], sizes = [8, 1], strides = [1, 1]} : vector<8x32xf32> to vector<8x1xf32>
    %21 = vector.extract_strided_slice %0 {offsets = [0, 20], sizes = [8, 1], strides = [1, 1]} : vector<8x32xf32> to vector<8x1xf32>
    %22 = vector.extract_strided_slice %0 {offsets = [0, 21], sizes = [8, 1], strides = [1, 1]} : vector<8x32xf32> to vector<8x1xf32>
    %23 = vector.extract_strided_slice %0 {offsets = [0, 22], sizes = [8, 1], strides = [1, 1]} : vector<8x32xf32> to vector<8x1xf32>
    %24 = vector.extract_strided_slice %0 {offsets = [0, 23], sizes = [8, 1], strides = [1, 1]} : vector<8x32xf32> to vector<8x1xf32>
    %25 = vector.extract_strided_slice %0 {offsets = [0, 24], sizes = [8, 1], strides = [1, 1]} : vector<8x32xf32> to vector<8x1xf32>
    %26 = vector.extract_strided_slice %0 {offsets = [0, 25], sizes = [8, 1], strides = [1, 1]} : vector<8x32xf32> to vector<8x1xf32>
    %27 = vector.extract_strided_slice %0 {offsets = [0, 26], sizes = [8, 1], strides = [1, 1]} : vector<8x32xf32> to vector<8x1xf32>
    %28 = vector.extract_strided_slice %0 {offsets = [0, 27], sizes = [8, 1], strides = [1, 1]} : vector<8x32xf32> to vector<8x1xf32>
    %c0_1 = arith.constant 0 : index
    %c0_2 = arith.constant 0 : index
    %c0_3 = arith.constant 0 : index
    %29 = vector.load %arg1[%c0_1, %c0_2, %c0_3] : memref<5x8x128xf32, #tpu.memory_space<vmem>>, vector<1x8x128xf32>
    %30 = vector.shape_cast %29 : vector<1x8x128xf32> to vector<8x128xf32>
    %c1 = arith.constant 1 : index
    %c0_4 = arith.constant 0 : index
    %c0_5 = arith.constant 0 : index
    %31 = vector.load %arg1[%c1, %c0_4, %c0_5] : memref<5x8x128xf32, #tpu.memory_space<vmem>>, vector<1x8x128xf32>
    %32 = vector.shape_cast %31 : vector<1x8x128xf32> to vector<8x128xf32>
    %c2 = arith.constant 2 : index
    %c0_6 = arith.constant 0 : index
    %c0_7 = arith.constant 0 : index
    %33 = vector.load %arg1[%c2, %c0_6, %c0_7] : memref<5x8x128xf32, #tpu.memory_space<vmem>>, vector<1x8x128xf32>
    %34 = vector.shape_cast %33 : vector<1x8x128xf32> to vector<8x128xf32>
    %c3 = arith.constant 3 : index
    %c0_8 = arith.constant 0 : index
    %c0_9 = arith.constant 0 : index
    %35 = vector.load %arg1[%c3, %c0_8, %c0_9] : memref<5x8x128xf32, #tpu.memory_space<vmem>>, vector<1x8x128xf32>
    %36 = vector.shape_cast %35 : vector<1x8x128xf32> to vector<8x128xf32>
    %c4 = arith.constant 4 : index
    %c0_10 = arith.constant 0 : index
    %c0_11 = arith.constant 0 : index
    %37 = vector.load %arg1[%c4, %c0_10, %c0_11] : memref<5x8x128xf32, #tpu.memory_space<vmem>>, vector<1x8x128xf32>
    %38 = vector.shape_cast %37 : vector<1x8x128xf32> to vector<8x128xf32>
    %39 = vector.broadcast %1 : vector<8x1xf32> to vector<8x128xf32>
    %40 = arith.mulf %39, %30 : vector<8x128xf32>
    %41 = vector.broadcast %2 : vector<8x1xf32> to vector<8x128xf32>
    %42 = arith.mulf %41, %32 : vector<8x128xf32>
    %43 = arith.addf %40, %42 : vector<8x128xf32>
    %44 = vector.broadcast %3 : vector<8x1xf32> to vector<8x128xf32>
    %45 = arith.mulf %44, %34 : vector<8x128xf32>
    %46 = arith.addf %43, %45 : vector<8x128xf32>
    %47 = vector.broadcast %10 : vector<8x1xf32> to vector<8x128xf32>
    %48 = arith.addf %46, %47 : vector<8x128xf32>
    %49 = vector.broadcast %4 : vector<8x1xf32> to vector<8x128xf32>
    %50 = arith.mulf %49, %30 : vector<8x128xf32>
    %51 = vector.broadcast %5 : vector<8x1xf32> to vector<8x128xf32>
    %52 = arith.mulf %51, %32 : vector<8x128xf32>
    %53 = arith.addf %50, %52 : vector<8x128xf32>
    %54 = vector.broadcast %6 : vector<8x1xf32> to vector<8x128xf32>
    %55 = arith.mulf %54, %34 : vector<8x128xf32>
    %56 = arith.addf %53, %55 : vector<8x128xf32>
    %57 = vector.broadcast %11 : vector<8x1xf32> to vector<8x128xf32>
    %58 = arith.addf %56, %57 : vector<8x128xf32>
    %59 = vector.broadcast %7 : vector<8x1xf32> to vector<8x128xf32>
    %60 = arith.mulf %59, %30 : vector<8x128xf32>
    %61 = vector.broadcast %8 : vector<8x1xf32> to vector<8x128xf32>
    %62 = arith.mulf %61, %32 : vector<8x128xf32>
    %63 = arith.addf %60, %62 : vector<8x128xf32>
    %64 = vector.broadcast %9 : vector<8x1xf32> to vector<8x128xf32>
    %65 = arith.mulf %64, %34 : vector<8x128xf32>
    %66 = arith.addf %63, %65 : vector<8x128xf32>
    %67 = vector.broadcast %12 : vector<8x1xf32> to vector<8x128xf32>
    %68 = arith.addf %66, %67 : vector<8x128xf32>
    %cst = arith.constant 5.000000e-01 : f32
    %69 = vector.broadcast %cst : f32 to vector<8x128xf32>
    %70 = arith.cmpf olt, %68, %69 : vector<8x128xf32>
    %cst_12 = arith.constant 5.000000e-01 : f32
    %71 = vector.broadcast %cst_12 : f32 to vector<8x128xf32>
    %72 = arith.select %70, %71, %68 : vector<8x128xi1>, vector<8x128xf32>
    %73 = tpu.reciprocal %72 {approx = true} : vector<8x128xf32> -> vector<8x128xf32>
    %74 = arith.mulf %72, %73 : vector<8x128xf32>
    %cst_13 = arith.constant 2.000000e+00 : f32
    %75 = vector.broadcast %cst_13 : f32 to vector<8x128xf32>
    %76 = arith.subf %75, %74 : vector<8x128xf32>
    %77 = arith.mulf %73, %76 : vector<8x128xf32>
    %78 = arith.mulf %48, %77 : vector<8x128xf32>
    %79 = arith.mulf %58, %77 : vector<8x128xf32>
    %80 = vector.broadcast %13 : vector<8x1xf32> to vector<8x128xf32>
    %81 = arith.cmpf olt, %78, %80 : vector<8x128xf32>
    %82 = vector.broadcast %14 : vector<8x1xf32> to vector<8x128xf32>
    %83 = arith.cmpf ogt, %78, %82 : vector<8x128xf32>
    %84 = arith.ori %81, %83 : vector<8x128xi1>
    %85 = vector.broadcast %15 : vector<8x1xf32> to vector<8x128xf32>
    %86 = arith.cmpf olt, %79, %85 : vector<8x128xf32>
    %87 = vector.broadcast %16 : vector<8x1xf32> to vector<8x128xf32>
    %88 = arith.cmpf ogt, %79, %87 : vector<8x128xf32>
    %89 = arith.ori %86, %88 : vector<8x128xi1>
    %90 = vector.broadcast %13 : vector<8x1xf32> to vector<8x128xf32>
    %91 = arith.maximumf %90, %78 : vector<8x128xf32>
    %92 = vector.broadcast %14 : vector<8x1xf32> to vector<8x128xf32>
    %93 = arith.minimumf %92, %91 : vector<8x128xf32>
    %94 = vector.broadcast %15 : vector<8x1xf32> to vector<8x128xf32>
    %95 = arith.maximumf %94, %79 : vector<8x128xf32>
    %96 = vector.broadcast %16 : vector<8x1xf32> to vector<8x128xf32>
    %97 = arith.minimumf %96, %95 : vector<8x128xf32>
    %98 = arith.ori %70, %84 : vector<8x128xi1>
    %99 = arith.mulf %36, %77 : vector<8x128xf32>
    %cst_14 = arith.constant 0.000000e+00 : f32
    %100 = vector.broadcast %cst_14 : f32 to vector<8x128xf32>
    %101 = arith.select %98, %100, %99 : vector<8x128xi1>, vector<8x128xf32>
    %102 = arith.ori %70, %89 : vector<8x128xi1>
    %103 = arith.mulf %38, %77 : vector<8x128xf32>
    %cst_15 = arith.constant 0.000000e+00 : f32
    %104 = vector.broadcast %cst_15 : f32 to vector<8x128xf32>
    %105 = arith.select %102, %104, %103 : vector<8x128xi1>, vector<8x128xf32>
    %106 = vector.broadcast %22 : vector<8x1xf32> to vector<8x128xf32>
    %107 = arith.mulf %106, %30 : vector<8x128xf32>
    %108 = vector.broadcast %21 : vector<8x1xf32> to vector<8x128xf32>
    %109 = arith.mulf %108, %34 : vector<8x128xf32>
    %110 = arith.addf %107, %109 : vector<8x128xf32>
    %111 = vector.broadcast %17 : vector<8x1xf32> to vector<8x128xf32>
    %112 = arith.mulf %111, %30 : vector<8x128xf32>
    %113 = vector.broadcast %18 : vector<8x1xf32> to vector<8x128xf32>
    %114 = arith.mulf %113, %34 : vector<8x128xf32>
    %115 = arith.addf %112, %114 : vector<8x128xf32>
    %116 = arith.mulf %93, %110 : vector<8x128xf32>
    %117 = arith.addf %115, %116 : vector<8x128xf32>
    %118 = arith.mulf %117, %101 : vector<8x128xf32>
    %119 = vector.broadcast %19 : vector<8x1xf32> to vector<8x128xf32>
    %120 = arith.mulf %119, %30 : vector<8x128xf32>
    %121 = vector.broadcast %20 : vector<8x1xf32> to vector<8x128xf32>
    %122 = arith.mulf %121, %34 : vector<8x128xf32>
    %123 = arith.addf %120, %122 : vector<8x128xf32>
    %124 = arith.mulf %97, %110 : vector<8x128xf32>
    %125 = arith.addf %123, %124 : vector<8x128xf32>
    %126 = arith.mulf %125, %105 : vector<8x128xf32>
    %127 = vector.broadcast %23 : vector<8x1xf32> to vector<8x128xf32>
    %128 = arith.mulf %127, %101 : vector<8x128xf32>
    %129 = vector.broadcast %26 : vector<8x1xf32> to vector<8x128xf32>
    %130 = arith.mulf %129, %105 : vector<8x128xf32>
    %131 = vector.broadcast %24 : vector<8x1xf32> to vector<8x128xf32>
    %132 = arith.mulf %131, %101 : vector<8x128xf32>
    %133 = vector.broadcast %27 : vector<8x1xf32> to vector<8x128xf32>
    %134 = arith.mulf %133, %105 : vector<8x128xf32>
    %135 = vector.broadcast %25 : vector<8x1xf32> to vector<8x128xf32>
    %136 = arith.subf %135, %93 : vector<8x128xf32>
    %137 = arith.mulf %136, %101 : vector<8x128xf32>
    %138 = vector.broadcast %28 : vector<8x1xf32> to vector<8x128xf32>
    %139 = arith.subf %138, %97 : vector<8x128xf32>
    %140 = arith.mulf %139, %105 : vector<8x128xf32>
    %141 = arith.mulf %118, %118 : vector<8x128xf32>
    %142 = arith.mulf %126, %126 : vector<8x128xf32>
    %143 = arith.addf %141, %142 : vector<8x128xf32>
    %cst_16 = arith.constant dense<0.000000e+00> : vector<8xf32>
    %144 = vector.multi_reduction <add>, %143, %cst_16 [1] : vector<8x128xf32> to vector<8xf32>
    %145 = vector.shape_cast %144 : vector<8xf32> to vector<8x1xf32>
    %146 = arith.mulf %118, %128 : vector<8x128xf32>
    %147 = arith.mulf %126, %130 : vector<8x128xf32>
    %148 = arith.addf %146, %147 : vector<8x128xf32>
    %cst_17 = arith.constant dense<0.000000e+00> : vector<8xf32>
    %149 = vector.multi_reduction <add>, %148, %cst_17 [1] : vector<8x128xf32> to vector<8xf32>
    %150 = vector.shape_cast %149 : vector<8xf32> to vector<8x1xf32>
    %151 = arith.mulf %118, %132 : vector<8x128xf32>
    %152 = arith.mulf %126, %134 : vector<8x128xf32>
    %153 = arith.addf %151, %152 : vector<8x128xf32>
    %cst_18 = arith.constant dense<0.000000e+00> : vector<8xf32>
    %154 = vector.multi_reduction <add>, %153, %cst_18 [1] : vector<8x128xf32> to vector<8xf32>
    %155 = vector.shape_cast %154 : vector<8xf32> to vector<8x1xf32>
    %156 = arith.mulf %118, %137 : vector<8x128xf32>
    %157 = arith.mulf %126, %140 : vector<8x128xf32>
    %158 = arith.addf %156, %157 : vector<8x128xf32>
    %cst_19 = arith.constant dense<0.000000e+00> : vector<8xf32>
    %159 = vector.multi_reduction <add>, %158, %cst_19 [1] : vector<8x128xf32> to vector<8xf32>
    %160 = vector.shape_cast %159 : vector<8xf32> to vector<8x1xf32>
    %161 = arith.mulf %128, %128 : vector<8x128xf32>
    %162 = arith.mulf %130, %130 : vector<8x128xf32>
    %163 = arith.addf %161, %162 : vector<8x128xf32>
    %cst_20 = arith.constant dense<0.000000e+00> : vector<8xf32>
    %164 = vector.multi_reduction <add>, %163, %cst_20 [1] : vector<8x128xf32> to vector<8xf32>
    %165 = vector.shape_cast %164 : vector<8xf32> to vector<8x1xf32>
    %166 = arith.mulf %128, %132 : vector<8x128xf32>
    %167 = arith.mulf %130, %134 : vector<8x128xf32>
    %168 = arith.addf %166, %167 : vector<8x128xf32>
    %cst_21 = arith.constant dense<0.000000e+00> : vector<8xf32>
    %169 = vector.multi_reduction <add>, %168, %cst_21 [1] : vector<8x128xf32> to vector<8xf32>
    %170 = vector.shape_cast %169 : vector<8xf32> to vector<8x1xf32>
    %171 = arith.mulf %128, %137 : vector<8x128xf32>
    %172 = arith.mulf %130, %140 : vector<8x128xf32>
    %173 = arith.addf %171, %172 : vector<8x128xf32>
    %cst_22 = arith.constant dense<0.000000e+00> : vector<8xf32>
    %174 = vector.multi_reduction <add>, %173, %cst_22 [1] : vector<8x128xf32> to vector<8xf32>
    %175 = vector.shape_cast %174 : vector<8xf32> to vector<8x1xf32>
    %176 = arith.mulf %132, %132 : vector<8x128xf32>
    %177 = arith.mulf %134, %134 : vector<8x128xf32>
    %178 = arith.addf %176, %177 : vector<8x128xf32>
    %cst_23 = arith.constant dense<0.000000e+00> : vector<8xf32>
    %179 = vector.multi_reduction <add>, %178, %cst_23 [1] : vector<8x128xf32> to vector<8xf32>
    %180 = vector.shape_cast %179 : vector<8xf32> to vector<8x1xf32>
    %181 = arith.mulf %132, %137 : vector<8x128xf32>
    %182 = arith.mulf %134, %140 : vector<8x128xf32>
    %183 = arith.addf %181, %182 : vector<8x128xf32>
    %cst_24 = arith.constant dense<0.000000e+00> : vector<8xf32>
    %184 = vector.multi_reduction <add>, %183, %cst_24 [1] : vector<8x128xf32> to vector<8xf32>
    %185 = vector.shape_cast %184 : vector<8xf32> to vector<8x1xf32>
    %186 = arith.mulf %137, %137 : vector<8x128xf32>
    %187 = arith.mulf %140, %140 : vector<8x128xf32>
    %188 = arith.addf %186, %187 : vector<8x128xf32>
    %cst_25 = arith.constant dense<0.000000e+00> : vector<8xf32>
    %189 = vector.multi_reduction <add>, %188, %cst_25 [1] : vector<8x128xf32> to vector<8xf32>
    %190 = vector.shape_cast %189 : vector<8xf32> to vector<8x1xf32>
    %191 = tpu.concatenate %145, %150, %155, %160, %165, %170, %175, %180, %185, %190 in 1 : vector<8x1xf32>, vector<8x1xf32>, vector<8x1xf32>, vector<8x1xf32>, vector<8x1xf32>, vector<8x1xf32>, vector<8x1xf32>, vector<8x1xf32>, vector<8x1xf32>, vector<8x1xf32> -> vector<8x10xf32>
    %c0_26 = arith.constant 0 : index
    %c0_27 = arith.constant 0 : index
    %192 = vector.load %arg3[%c0_26, %c0_27] : memref<8x10xf32, #tpu.memory_space<vmem>>, vector<8x10xf32>
    tpu.vector_store %arg3[%c0_26, %c0_27], %191 {strides = array<i32>} : memref<8x10xf32, #tpu.memory_space<vmem>>, vector<8x10xf32>,
    return
  }
  func.func @transform_0(%arg0: i32) -> (i32, i32, i32) {
    %c0_i32 = arith.constant 0 : i32
    %c0_i32_0 = arith.constant 0 : i32
    %c0_i32_1 = arith.constant 0 : i32
    return %c0_i32, %arg0, %c0_i32_0 : i32, i32, i32
  }
  func.func @transform_1(%arg0: i32) -> (i32, i32) {
    %c0_i32 = arith.constant 0 : i32
    %c0_i32_0 = arith.constant 0 : i32
    return %arg0, %c0_i32 : i32, i32
  }
  func.func @transform_2(%arg0: i32) -> (i32, i32) {
    %c0_i32 = arith.constant 0 : i32
    %c0_i32_0 = arith.constant 0 : i32
    return %arg0, %c0_i32 : i32, i32
  }
}

</mosaic_0001>

<bundles_post_ra>
// kernel: tpu_custom_call.1
= control target key start
LH: loop header
LB: loop body
LE: loop exit
PB: predicated region body
PF: predicated region fallthrough
CT: control target
= control target key end

     0   :  { %7 = vsyncpa [#allocation3], 0  ;;  %s581_s0 = inlined_call_operand.hbm [shape: f32[5,8,128], index: 0, kind: input, shape index: {}]   ;;  %s582_s1 = inlined_call_operand.hbm [shape: f32[8,32], index: 1, kind: input, shape index: {}]   ;;  %s583_s2 = inlined_call_operand.hbm [shape: f32[8,10], index: 2, kind: output, shape index: {}]  }
   0x1   :  { %8 = vsyncpa [#allocation6], 0 }
   0x2   :  { %9 = vsyncpa [#allocation4], 0  ;;  %s448_s9 = smov [#allocation2]   ;;  %s376_s13 = scalar_lea.hbm %s581_s0, 640 }
   0x3   :  { %s15_s10 = sshll.u32 %s448_s9, 4  ;;  %p377_p0 = scmp.ne.s32.totalorder %s581_s0, %s376_s13  ;;  %s16_s10 = int_to_ptr.vmem [resolvable:$true] %s15_s10 }
   0x4   :  { %p380_p1 = scmp.lt.u32.totalorder %s376_s13, %s581_s0 }
   0x6   :  { %p382_p2 = pnand %p380_p1, %p377_p0 }
   0x8   :  { %385 = shalt.err (!%p382_p2)
}
   0x9   :  { %s386_s18 = scalar_lea.vmem %s16_s10, 640  ;;  %p391_p4 = scmp.lt.s32.totalorder %s16_s10, %s16_s10 }
   0xa   :  { %p387_p3 = scmp.ne.s32.totalorder %s16_s10, %s386_s18  ;;  %p392_p5 = scmp.lt.s32.totalorder %s386_s18, %s386_s18 }
   0xc   :  { %p393_p6 = por %p392_p5, %p391_p4 }
   0xe   :  { %p394_p7 = pnand %p393_p6, %p387_p3 }
  0x10   :  { %397 = shalt.err (!%p394_p7)
}
  0x11   :  { %s449_s19 = smov 128   ;;  %s450_s20 = smov 8  }
  0x12   :  { %21 = dma.hbm_to_vmem [thread:$0]  %s581_s0, 640, %s16_s10, [#allocation3], %s449_s19, %s449_s19, %s450_s20  }
  0x13   :  { %s451_s23 = smov [#allocation5]   ;;  %s398_s27 = scalar_lea.hbm %s582_s1, 128 }
  0x14   :  { %s28_s24 = sshll.u32 %s451_s23, 4  ;;  %p399_p8 = scmp.ne.s32.totalorder %s582_s1, %s398_s27  ;;  %s29_s24 = int_to_ptr.vmem [resolvable:$true] %s28_s24 }
  0x15   :  { %p402_p9 = scmp.lt.u32.totalorder %s398_s27, %s582_s1 }
  0x17   :  { %p404_p10 = pnand %p402_p9, %p399_p8 }
  0x19   :  { %407 = shalt.err (!%p404_p10)
}
  0x1a   :  { %s408_s4 = scalar_lea.vmem %s29_s24, 128  ;;  %p413_p12 = scmp.lt.s32.totalorder %s29_s24, %s29_s24 }
  0x1b   :  { %p409_p11 = scmp.ne.s32.totalorder %s29_s24, %s408_s4  ;;  %p414_p13 = scmp.lt.s32.totalorder %s408_s4, %s408_s4 }
  0x1d   :  { %p415_p0 = por %p414_p13, %p413_p12 }
  0x1f   :  { %p416_p1 = pnand %p415_p0, %p409_p11 }
  0x21   :  { %419 = shalt.err (!%p416_p1)
}
  0x22   :  { %31 = dma.hbm_to_vmem [thread:$0]  %s582_s1, 128, %s29_s24, [#allocation6]  }
  0x23   :  { %442 = dma.done.wait [#allocation3], 640  }
  0x24   :  { %443 = vsyncadd [#allocation3], 4294966656 }
  0x25   :  { %444 = dma.done.wait [#allocation6], 128  }
  0x26   :  { %445 = vsyncadd [#allocation6], 4294967168  ;;  %v452_v0 = vmov 8   ;;  %v453_v1 = vmov 6   ;;  %v520_v2 = vld [vmem:[#allocation5] sm:$0xff]  ;;  %v454_v3 = vmov 11  }
  0x27   :  { %347 = vset.pattern.permute.xlu1 %v452_v0  ;;  %345 = vset.pattern.permute.xlu0 %v453_v1  ;;  %v455_v4 = vmov 7   ;;  %v456_v5 = vmov 0   ;;  %v457_v6 = vmov 1   ;;  %v458_v7 = vmov 3   ;;  %v550_v31 = vld [vmem:[#allocation2] sm:$0xff]  ;;  %v41_v33 = vld [vmem:[#allocation2 + $0x8] sm:$0xff] }
  0x28   :  { %105 = vperm.xlu1 %347, %v520_v2   ;;  %94 = vperm.xlu0 %345, %v520_v2   ;;  %v459_v8 = vmov 2   ;;  %v460_v9 = vmov 4   ;;  %v461_v10 = vmov 10   ;;  %v462_v11 = vmov 5   ;;  %v553_v38 = vld [vmem:[#allocation2 + $0x10] sm:$0xff]  ;;  %s480_s1 = smov [#allocation7]  }
  0x29   :  { %v463_v12 = vmov 21   ;;  %v464_v13 = vmov 9   ;;  %v465_v14 = vmov 15   ;;  %v466_v15 = vmov 12   ;;  %s302_s6 = sshll.u32 %s480_s1, 4  ;;  %s303_s6 = int_to_ptr.vmem [resolvable:$true] %s302_s6 }
  0x2a   :  { %v467_v16 = vmov 18   ;;  %v468_v17 = vmov 14   ;;  %v469_v18 = vmov 25   ;;  %v470_v19 = vmov 20   ;;  %s420_s7 = scalar_lea.vmem %s303_s6, 128  ;;  %p425_p3 = scmp.lt.s32.totalorder %s303_s6, %s303_s6 }
  0x2b   :  { %v471_v20 = vmov 23   ;;  %v472_v21 = vmov 13   ;;  %v473_v22 = vmov 27   ;;  %v474_v23 = vmov 16   ;;  %p421_p2 = scmp.ne.s32.totalorder %s303_s6, %s420_s7  ;;  %p426_p4 = scmp.lt.s32.totalorder %s420_s7, %s420_s7 }
  0x2c   :  { %348 = vset.pattern.permute.xlu1 %v454_v3  ;;  %346 = vset.pattern.permute.xlu0 %v455_v4  ;;  %v475_v24 = vmov 17   ;;  %v476_v25 = vmov 19   ;;  %v477_v26 = vmov 22   ;;  %v478_v27 = vmov 24  }
  0x2d   :  { %111 = vperm.xlu1 %348, %v520_v2   ;;  %99 = vperm.xlu0 %346, %v520_v2   ;;  %v479_v28 = vmov 26   ;;  %vm276_vm9 = vcmask 7168   ;;  %vm278_vm10 = vcmask 15360   ;;  %vm280_vm11 = vcmask 23552   ;;  %p427_p5 = por %p426_p4, %p425_p3 }
  0x2e   :  { %vm282_vm12 = vcmask 31744   ;;  %vm284_vm13 = vcmask 39936   ;;  %vm286_vm14 = vcmask 48128   ;;  %vm288_vm15 = vcmask 56320  }
  0x2f   :  { %p428_p6 = pnand %p427_p5, %p421_p2 }
  0x31   :  { %349 = vset.pattern.permute.xlu1 %v456_v5  ;;  %350 = vset.pattern.permute.xlu0 %v457_v6 }
  0x32   :  { %50 = vperm.xlu1 %349, %v520_v2   ;;  %55 = vperm.xlu0 %350, %v520_v2  }
  0x36   :  { %351 = vset.pattern.permute.xlu1 %v458_v7  ;;  %353 = vset.pattern.permute.xlu0 %v459_v8 }
  0x37   :  { %72 = vperm.xlu1 %351, %v520_v2   ;;  %61 = vperm.xlu0 %353, %v520_v2  }
  0x3b   :  { %352 = vset.pattern.permute.xlu1 %v460_v9  ;;  %356 = vset.pattern.permute.xlu0 %v461_v10 }
  0x3c   :  { %77 = vperm.xlu1 %352, %v520_v2   ;;  %89 = vperm.xlu0 %356, %v520_v2  }
  0x40   :  { %354 = vset.pattern.permute.xlu1 %v462_v11  ;;  %359 = vset.pattern.permute.xlu0 %v463_v12 }
  0x41   :  { %83 = vperm.xlu1 %354, %v520_v2   ;;  %156 = vperm.xlu0 %359, %v520_v2  }
  0x45   :  { %355 = vset.pattern.permute.xlu1 %v464_v13  ;;  %362 = vset.pattern.permute.xlu0 %v465_v14 }
  0x46   :  { %67 = vperm.xlu1 %355, %v520_v2   ;;  %140 = vperm.xlu0 %362, %v520_v2  }
  0x4a   :  { %357 = vset.pattern.permute.xlu1 %v466_v15  ;;  %365 = vset.pattern.permute.xlu0 %v467_v16 }
  0x4b   :  { %124 = vperm.xlu1 %357, %v520_v2   ;;  %181 = vperm.xlu0 %365, %v520_v2  }
  0x4f   :  { %358 = vset.pattern.permute.xlu1 %v468_v17  ;;  %368 = vset.pattern.permute.xlu0 %v469_v18  ;;  %v47_v17 = vld [vmem:[#allocation2 + $0x20] sm:$0xff] }
  0x50   :  { %135 = vperm.xlu1 %358, %v520_v2   ;;  %200 = vperm.xlu0 %368, %v520_v2  }
  0x54   :  { %360 = vset.pattern.permute.xlu1 %v470_v19  ;;  %371 = vset.pattern.permute.xlu0 %v471_v20 }
  0x55   :  { %161 = vperm.xlu1 %360, %v520_v2   ;;  %205 = vperm.xlu0 %371, %v520_v2  }
  0x59   :  { %361 = vset.pattern.permute.xlu1 %v472_v21  ;;  %373 = vset.pattern.permute.xlu0 %v473_v22 }
  0x5a   :  { %129 = vperm.xlu1 %361, %v520_v2  }
  0x5e   :  { %363 = vset.pattern.permute.xlu1 %v474_v23 }
  0x5f   :  { %167 = vperm.xlu1 %363, %v520_v2  }
  0x63   :  { %364 = vset.pattern.permute.xlu1 %v475_v24 }
  0x64   :  { %172 = vperm.xlu1 %364, %v520_v2  }
  0x68   :  { %366 = vset.pattern.permute.xlu1 %v476_v25  ;;  %v45_v25 = vld [vmem:[#allocation2 + $0x18] sm:$0xff] }
  0x69   :  { %186 = vperm.xlu1 %366, %v520_v2  }
  0x6d   :  { %367 = vset.pattern.permute.xlu1 %v477_v26 }
  0x6e   :  { %195 = vperm.xlu1 %367, %v520_v2  }
  0x72   :  { %369 = vset.pattern.permute.xlu1 %v478_v27 }
  0x73   :  { %215 = vperm.xlu1 %369, %v520_v2  }
  0x77   :  { %370 = vset.pattern.permute.xlu1 %v473_v22 }
  0x78   :  { %221 = vperm.xlu1 %370, %v520_v2  }
  0x7c   :  { %372 = vset.pattern.permute.xlu1 %v479_v28 }
  0x7d   :  { %210 = vperm.xlu1 %372, %v520_v2  }
  0xa7   :  { %v106_v29 = vpop.permute.xlu1 %105  ;;  %v95_v30 = vpop.permute.xlu0 %94 }
  0xa8   :  { %v97_v35 = vmul.f32 %v95_v30, %v550_v31  ;;  %v108_v40 = vmul.f32 %v106_v29, %v553_v38 }
  0xac   :  { %v112_v32 = vpop.permute.xlu1 %111  ;;  %v100_v34 = vpop.permute.xlu0 %99 }
  0xad   :  { %v102_v36 = vmul.f32 %v100_v34, %v41_v33 }
  0xaf   :  { %v103_v39 = vadd.f32 %v102_v36, %v97_v35 }
  0xb1   :  { %v51_v37 = vpop.permute.xlu1 %50  ;;  %v109_v42 = vadd.f32 %v108_v40, %v103_v39  ;;  %v56_v48 = vpop.permute.xlu0 %55 }
  0xb2   :  { %v53_v58 = vmul.f32 %v51_v37, %v550_v31  ;;  %v58_v59 = vmul.f32 %v56_v48, %v41_v33 }
  0xb3   :  { %v114_v43 = vadd.f32 %v112_v32, %v109_v42 }
  0xb4   :  { %v59_v1 = vadd.f32 %v58_v59, %v53_v58 }
  0xb5   :  { %vm115_vm0 = vcmp.lt.f32.partialorder %v114_v43, 0.5 }
  0xb6   :  { %v73_v41 = vpop.permute.xlu1 %72  ;;  %v116_v46 = vsel %vm115_vm0, 0.5, %v114_v43  ;;  %v62_v51 = vpop.permute.xlu0 %61 }
  0xb7   :  { %374 = vrcp.f32 %v116_v46  ;;  %v75_v55 = vmul.f32 %v73_v41, %v550_v31  ;;  %v64_v63 = vmul.f32 %v62_v51, %v553_v38 }
  0xb9   :  { %v65_v6 = vadd.f32 %v64_v63, %v59_v1 }
  0xbb   :  { %v78_v44 = vpop.permute.xlu1 %77  ;;  %v90_v57 = vpop.permute.xlu0 %89 }
  0xbc   :  { %v80_v53 = vmul.f32 %v78_v44, %v41_v33 }
  0xbe   :  { %v81_v60 = vadd.f32 %v80_v53, %v75_v55 }
  0xc0   :  { %v84_v45 = vpop.permute.xlu1 %83  ;;  %v157_v2 = vpop.permute.xlu0 %156 }
  0xc1   :  { %v375_v50 = vpop.eup %374  ;;  %v86_v56 = vmul.f32 %v84_v45, %v553_v38  ;;  %v159_v12 = vmul.f32 %v157_v2, %v550_v31 }
  0xc2   :  { %v118_v54 = vmul.f32 %v375_v50, %v116_v46 }
  0xc3   :  { %v87_v0 = vadd.f32 %v86_v56, %v81_v60 }
  0xc4   :  { %v119_v62 = vsub.f32 2.0, %v118_v54 }
  0xc5   :  { %v68_v47 = vpop.permute.xlu1 %67  ;;  %v92_v5 = vadd.f32 %v90_v57, %v87_v0  ;;  %v141_v10 = vpop.permute.xlu0 %140 }
  0xc6   :  { %v120_v4 = vmul.f32 %v375_v50, %v119_v62  ;;  %v70_v7 = vadd.f32 %v68_v47, %v65_v6 }
  0xc8   :  { %v122_v8 = vmul.f32 %v120_v4, %v92_v5  ;;  %v121_v11 = vmul.f32 %v120_v4, %v70_v7  ;;  %v153_v23 = vmul.f32 %v120_v4, %v47_v17  ;;  %v150_v34 = vmul.f32 %v120_v4, %v45_v25 }
  0xca   :  { %v125_v49 = vpop.permute.xlu1 %124  ;;  %vm143_vm2 = vcmp.gt.f32.partialorder %v122_v8, %v141_v10  ;;  %v182_v13 = vpop.permute.xlu0 %181 }
  0xcb   :  { %v145_v16 = vmax.f32 %v125_v49, %v121_v11  ;;  %vm127_vm5 = vcmp.lt.f32.partialorder %v121_v11, %v125_v49  ;;  %v184_v22 = vmul.f32 %v182_v13, %v550_v31 }
  0xcf   :  { %v136_v52 = vpop.permute.xlu1 %135  ;;  %v201_v29 = vpop.permute.xlu0 %200 }
  0xd0   :  { %vm138_vm1 = vcmp.lt.f32.partialorder %v122_v8, %v136_v52  ;;  %v147_v19 = vmax.f32 %v136_v52, %v122_v8 }
  0xd1   :  { %vm144_vm3 = vmor %vm138_vm1, %vm143_vm2  ;;  %vm292_vm1 = vcmask 72704   ;;  %vm294_vm2 = vcmask 80896  }
  0xd2   :  { %vm152_vm6 = vmor %vm115_vm0, %vm144_vm3  ;;  %v148_v32 = vmin.f32 %v141_v10, %v147_v19 }
  0xd3   :  { %v154_v28 = vsel %vm152_vm6, 0.0, %v153_v23 }
  0xd4   :  { %v162_v61 = vpop.permute.xlu1 %161  ;;  %v203_v37 = vmul.f32 %v201_v29, %v154_v28  ;;  %v206_v52 = vpop.permute.xlu0 %205 }
  0xd5   :  { %v164_v14 = vmul.f32 %v162_v61, %v553_v38 }
  0xd6   :  { %v247_v47 = vmul.f32 %v203_v37, %v203_v37 }
  0xd7   :  { %v165_v24 = vadd.f32 %v164_v14, %v159_v12 }
  0xd9   :  { %v130_v3 = vpop.permute.xlu1 %129  ;;  %v191_v36 = vmul.f32 %v165_v24, %v148_v32 }
  0xda   :  { %vm132_vm4 = vcmp.gt.f32.partialorder %v121_v11, %v130_v3  ;;  %v146_v20 = vmin.f32 %v130_v3, %v145_v16 }
  0xdb   :  { %vm133_vm7 = vmor %vm127_vm5, %vm132_vm4 }
  0xdc   :  { %vm149_vm8 = vmor %vm115_vm0, %vm133_vm7  ;;  %v177_v33 = vmul.f32 %v165_v24, %v146_v20  ;;  %vm290_vm0 = vcmask 64512  }
  0xde   :  { %v168_v9 = vpop.permute.xlu1 %167 }
  0xdf   :  { %v170_v21 = vmul.f32 %v168_v9, %v550_v31  ;;  %v151_v31 = vsel %vm149_vm8, 0.0, %v150_v34 }
  0xe0   :  { %v208_v55 = vmul.f32 %v206_v52, %v151_v31 }
  0xe3   :  { %v173_v15 = vpop.permute.xlu1 %172 }
  0xe4   :  { %v175_v18 = vmul.f32 %v173_v15, %v553_v38  ;;  %v261_v15 = vmul.f32 %v208_v55, %v208_v55 }
  0xe6   :  { %v176_v26 = vadd.f32 %v175_v18, %v170_v21 }
  0xe8   :  { %v187_v27 = vpop.permute.xlu1 %186  ;;  %v178_v39 = vadd.f32 %v177_v33, %v176_v26 }
  0xe9   :  { %v189_v30 = vmul.f32 %v187_v27, %v553_v38 }
  0xea   :  { %v179_v45 = vmul.f32 %v178_v39, %v151_v31 }
  0xeb   :  { %v190_v35 = vadd.f32 %v189_v30, %v184_v22 }
  0xec   :  { %v236_v59 = vmul.f32 %v208_v55, %v179_v45  ;;  %v226_v4 = vmul.f32 %v179_v45, %v179_v45 }
  0xed   :  { %v196_v40 = vpop.permute.xlu1 %195  ;;  %v192_v41 = vadd.f32 %v191_v36, %v190_v35 }
  0xee   :  { %v198_v42 = vmul.f32 %v196_v40, %v151_v31 }
  0xef   :  { %v193_v44 = vmul.f32 %v192_v41, %v154_v28 }
  0xf0   :  { %v246_v46 = vmul.f32 %v198_v42, %v198_v42  ;;  %v231_v38 = vmul.f32 %v198_v42, %v179_v45  ;;  %v251_v61 = vmul.f32 %v208_v55, %v198_v42 }
  0xf1   :  { %v232_v50 = vmul.f32 %v203_v37, %v193_v44  ;;  %v227_v2 = vmul.f32 %v193_v44, %v193_v44 }
  0xf2   :  { %v216_v48 = vpop.permute.xlu1 %215  ;;  %v248_v49 = vadd.f32 %v247_v47, %v246_v46 }
  0xf3   :  { %v233_v43 = vadd.f32 %v232_v50, %v231_v38  ;;  %v218_v54 = vsub.f32 %v216_v48, %v146_v20  ;;  %v228_v6 = vadd.f32 %v227_v2, %v226_v4 }
  0xf4   :  { %249 = vadd.xlane.f32.xlu0 %v248_v49 }
  0xf5   :  { %v219_v60 = vmul.f32 %v218_v54, %v151_v31 }
  0xf7   :  { %v222_v51 = vpop.permute.xlu1 %221  ;;  %v256_v5 = vmul.f32 %v219_v60, %v198_v42  ;;  %v241_v10 = vmul.f32 %v219_v60, %v179_v45  ;;  %v266_v11 = vmul.f32 %v219_v60, %v208_v55  ;;  %v271_v18 = vmul.f32 %v219_v60, %v219_v60 }
  0xf8   :  { %234 = vadd.xlane.f32.xlu0 %v233_v43  ;;  %v224_v53 = vsub.f32 %v222_v51, %v148_v32 }
  0xfa   :  { %v225_v57 = vmul.f32 %v224_v53, %v154_v28 }
  0xfc   :  { %v211_v56 = vpop.permute.xlu1 %210  ;;  %v257_v3 = vmul.f32 %v225_v57, %v203_v37  ;;  %v242_v8 = vmul.f32 %v225_v57, %v193_v44  ;;  %v272_v17 = vmul.f32 %v225_v57, %v225_v57 }
  0xfd   :  { %v213_v58 = vmul.f32 %v211_v56, %v154_v28 }
  0xfe   :  { %v258_v7 = vadd.f32 %v257_v3, %v256_v5  ;;  %v243_v12 = vadd.f32 %v242_v8, %v241_v10  ;;  %v273_v19 = vadd.f32 %v272_v17, %v271_v18 }
  0xff   :  { %v252_v62 = vmul.f32 %v213_v58, %v203_v37  ;;  %v237_v63 = vmul.f32 %v213_v58, %v193_v44  ;;  %v267_v9 = vmul.f32 %v225_v57, %v213_v58  ;;  %v262_v14 = vmul.f32 %v213_v58, %v213_v58 }
 0x101   :  { %v253_v0 = vadd.f32 %v252_v62, %v251_v61  ;;  %v238_v1 = vadd.f32 %v237_v63, %v236_v59  ;;  %v268_v13 = vadd.f32 %v267_v9, %v266_v11  ;;  %v263_v16 = vadd.f32 %v262_v14, %v261_v15 }
 0x103   :  { %254 = vadd.xlane.f32.xlu1 %v253_v0  ;;  %239 = vadd.xlane.f32.xlu0 %v238_v1 }
 0x107   :  { %229 = vadd.xlane.f32.xlu1 %v228_v6  ;;  %259 = vadd.xlane.f32.xlu0 %v258_v7 }
 0x10b   :  { %244 = vadd.xlane.f32.xlu1 %v243_v12  ;;  %269 = vadd.xlane.f32.xlu0 %v268_v13 }
 0x10f   :  { %264 = vadd.xlane.f32.xlu1 %v263_v16 }
 0x113   :  { %274 = vadd.xlane.f32.xlu1 %v273_v19 }
 0x181   :  { %v250_v20 = vpop.xlane.xlu0 %249 }
 0x185   :  { %v235_v21 = vpop.xlane.xlu0 %234 }
 0x190   :  { %v255_v22 = vpop.xlane.xlu1 %254  ;;  %v240_v23 = vpop.xlane.xlu0 %239 }
 0x194   :  { %v230_v24 = vpop.xlane.xlu1 %229  ;;  %v260_v28 = vpop.xlane.xlu0 %259 }
 0x195   :  { %v277_v25 = vsel %vm276_vm9, %v230_v24, %v235_v21 }
 0x196   :  { %v279_v27 = vsel %vm278_vm10, %v277_v25, %v240_v23 }
 0x198   :  { %v245_v26 = vpop.xlane.xlu1 %244  ;;  %v270_v36 = vpop.xlane.xlu0 %269 }
 0x199   :  { %v281_v29 = vsel %vm280_vm11, %v279_v27, %v245_v26 }
 0x19a   :  { %v283_v30 = vsel %vm282_vm12, %v281_v29, %v250_v20 }
 0x19b   :  { %v285_v32 = vsel %vm284_vm13, %v283_v30, %v255_v22 }
 0x19c   :  { %v265_v33 = vpop.xlane.xlu1 %264  ;;  %v287_v34 = vsel %vm286_vm14, %v285_v32, %v260_v28 }
 0x19d   :  { %v289_v35 = vsel %vm288_vm15, %v287_v34, %v265_v33 }
 0x19e   :  { %v291_v39 = vsel %vm290_vm0, %v289_v35, %v270_v36 }
 0x1a0   :  { %v275_v37 = vpop.xlane.xlu1 %274 }
 0x1a1   :  { %v293_v31 = vsel %vm292_vm1, %v291_v39, %v275_v37 }
 0x1a2   :  { %295 = vst.msk [vmem:[#allocation7] sm:$0xff] %vm294_vm2, %v293_v31 }
 0x1a3   :  { %431 = shalt.err (!%p428_p6)
}
 0x1a4   :  { %s432_s10 = scalar_lea.hbm %s583_s2, 128 }
 0x1a5   :  { %p433_p7 = scmp.ne.s32.totalorder %s583_s2, %s432_s10  ;;  %p436_p8 = scmp.lt.u32.totalorder %s432_s10, %s583_s2 }
 0x1a7   :  { %p438_p9 = pnand %p436_p8, %p433_p7 }
 0x1a9   :  { %441 = shalt.err (!%p438_p9)
}
 0x1aa   :  { %305 = dma.vmem_to_hbm [thread:$0]  %s303_s6, 128, %s583_s2, [#allocation4]  }
 0x1ab   :  { %446 = dma.done.wait [#allocation4], 128  }
 0x1ac   :  { %447 = vsyncadd [#allocation4], 4294967168 }
 0x1ad   :  { %309 = vsyncpa [#allocation3], 1 }
 0x1ae   :  { %310 = vsyncpa [#allocation6], 1 }
 0x1af   :  { %311 = vsyncpa [#allocation4], 1 }

</bundles_post_ra>
